<compile_context>
chip_gen: v5e
topology: v5e:2x2
jax: 0.10.0
libtpu: 0.0.40
codegen_flags: <defaults>
</compile_context>

<pallas_src>
import functools

import jax
import jax.numpy as jnp
import numpy as np
from jax.experimental import pallas as pl
from jax.experimental.pallas import tpu as pltpu


_VMEM = pl.BlockSpec(memory_space=pltpu.MemorySpace.VMEM)


# ---------------------------------------------------------------------------
# The single fused Pallas kernel
# ---------------------------------------------------------------------------
def _cnn_kernel(p1_ref, w1_ref, b1_ref, a_ref, zb_ref, wo_ref, bo_ref, o_ref, *,
                batch, mpad):
    """Whole CNN forward after the conv1 im2col.

    p1_ref: (25, 4*mpad) conv1 patches; lane = e2*mpad + n*128 + (ph*11 + pw), e2 = 2x2
            max-pool window element, lanes 121..127 of each 128-block are zero padding.
    w1_ref: (16, 25)  conv1 weights          b1_ref: (16, 1) conv1 bias
    a_ref:  (2048, 32) folded conv2+avgpool3+conv3 linear map; rows = c*128 + ph*11 + pw
            (zero rows for the pad lanes), cols = (qh, qw, cout3) flattened
    zb_ref: (1, 32)   folded conv2/conv3 bias offset
    wo_ref: (8, C)    output Linear weight (transposed)   bo_ref: (1, C)
    o_ref:  (batch, C)
    """
    c1 = w1_ref.shape[0]                       # 16 conv1 output channels
    co = wo_ref.shape[0]                       # 8 conv3 output channels

    # ---- conv1: ONE MXU call covering all four max-pool window elements ----------
    conv = jnp.dot(w1_ref[...], p1_ref[...],
                   preferred_element_type=jnp.float32)          # (16, 4*mpad)
    # 2x2 max-pool == VPU max of the four 128-aligned lane blocks;
    # max-pool(ReLU(conv + b)) == ReLU(max(conv) + b): ReLU monotone, bias constant.
    pooled = jnp.maximum(
        jnp.maximum(conv[:, 0 * mpad:1 * mpad], conv[:, 1 * mpad:2 * mpad]),
        jnp.maximum(conv[:, 2 * mpad:3 * mpad], conv[:, 3 * mpad:4 * mpad]))
    r1 = jnp.maximum(pooled + b1_ref[...], 0.0)                 # (16, mpad)

    # ---- flatten (channel, pixel) per sample onto the lane axis -------------------
    # Only single-sublane selects + 128-aligned lane concats (no XLU transpose).
    r1f = jnp.concatenate(
        [jnp.concatenate([r1[c:c + 1, b * 128:(b + 1) * 128] for c in range(c1)],
                         axis=1)
         for b in range(batch)],
        axis=0)                                                 # (batch, 2048)

    # ---- conv2 + AvgPool3 + conv3 folded into ONE matmul (K = 2048) ----------------
    z = jnp.dot(r1f, a_ref[...],
                preferred_element_type=jnp.float32) + zb_ref[...]   # (batch, 32)

    # ---- final 2x2 max-pool over the 4 spatial positions, then Linear --------------
    m = z[:, 0:co]
    for p in range(1, 4):
        m = jnp.maximum(m, z[:, p * co:(p + 1) * co])               # (batch, 8)
    o_ref[...] = jnp.dot(m, wo_ref[...],
                         preferred_element_type=jnp.float32) + bo_ref[...]


# ---------------------------------------------------------------------------
# XLA glue: conv1 im2col (fuses under jit) in the kernel's lane layout
# ---------------------------------------------------------------------------
def _conv1_patches(x_nchw):
    """Patches for conv1 (5x5, stride 3, pad 3) on a 64x64 single-channel input,
    laid out as (25, 4*N*128): four 2x2-max-pool window elements as lane blocks of
    N*128, within each block lane = n*128 + ph*11 + pw (lanes 121..127 zero)."""
    n = x_nchw.shape[0]
    xp = jnp.pad(x_nchw[:, 0], ((0, 0), (3, 3), (3, 3)))          # (N, 70, 70)
    cols = [xp[:, ki:ki + 64:3, kj:kj + 64:3]                     # (N, 22, 22) each
            for ki in range(5) for kj in range(5)]
    pat = jnp.stack(cols, axis=0)                                 # (25, N, 22, 22)
    pat = pat.reshape(25, n, 11, 2, 11, 2)                        # (k, n, ph, eh, pw, ew)
    pat = pat.transpose(0, 3, 5, 1, 2, 4)                         # (k, eh, ew, n, ph, pw)
    pat = pat.reshape(25, 4, n, 121)
    pat = jnp.pad(pat, ((0, 0), (0, 0), (0, 0), (0, 7)))          # pad pixels 121 -> 128
    return pat.reshape(25, 4 * n * 128)


# ---------------------------------------------------------------------------
# Parameter packing: fold conv2 + avgpool3 + conv3 into one (2048, 32) matrix
# ---------------------------------------------------------------------------
def pack_params(params):
    dn = ("NCHW", "OIHW", "NCHW")
    hp = jax.lax.Precision.HIGHEST

    def conv(x, w, s, p):
        return jax.lax.conv_general_dilated(
            x, w, (s, s), [(p, p), (p, p)], dimension_numbers=dn, precision=hp)

    def mid_affine(x, with_bias):
        y = conv(x, params["w2"], 2, 2)
        if with_bias:
            y = y + params["b2"].reshape(1, -1, 1, 1)
        y = jax.lax.reduce_window(y, 0.0, jax.lax.add,
                                  (1, 1, 3, 3), (1, 1, 3, 3), "VALID") / 9.0
        y = conv(y, params["w3"], 1, 1)
        if with_bias:
            y = y + params["b3"].reshape(1, -1, 1, 1)
        return y                                                  # (B, 8, 2, 2)

    # Linear part: probe with the 16*11*11 basis vectors (no hand-derived index math).
    basis = jnp.eye(16 * 11 * 11, dtype=jnp.float32).reshape(-1, 16, 11, 11)
    a = mid_affine(basis, with_bias=False)                        # (1936, 8, 2, 2)
    a = a.transpose(0, 2, 3, 1).reshape(16, 121, 32)              # rows (c,h,w); cols (qh,qw,e)
    a = jnp.pad(a, ((0, 0), (0, 7), (0, 0))).reshape(16 * 128, 32)
    # Affine offset (bias propagation through conv2 / avg-pool / conv3).
    zb = mid_affine(jnp.zeros((1, 16, 11, 11), jnp.float32), with_bias=True)
    zb = zb.transpose(0, 2, 3, 1).reshape(1, 32)

    return {
        "w1t": params["w1"].reshape(16, 25),
        "b1": params["b1"].reshape(16, 1),
        "A": a,
        "zb": zb,
        "woT": params["wo"].T,                                    # (8, C)
        "bo": params["bo"].reshape(1, -1),
    }


@jax.jit
def cnn_forward(packed, x_nchw):
    assert x_nchw.shape[1:] == (1, 64, 64), "kernel geometry is specialized to 1x64x64"
    n = x_nchw.shape[0]
    cat = packed["bo"].shape[1]
    p1 = _conv1_patches(x_nchw)                                   # (25, 4*n*128)
    kern = functools.partial(_cnn_kernel, batch=n, mpad=n * 128)
    return pl.pallas_call(
        kern,
        out_shape=jax.ShapeDtypeStruct((n, cat), jnp.float32),
        in_specs=[_VMEM] * 7,
        out_specs=_VMEM,
    )(p1, packed["w1t"], packed["b1"], packed["A"], packed["zb"],
      packed["woT"], packed["bo"])


# ---------------------------------------------------------------------------
# Pure-JAX reference and parameter init
# ---------------------------------------------------------------------------
def reference_forward(params, x_nchw):
    dn = ("NCHW", "OIHW", "NCHW")

    def conv(x, w, b, s, p):
        y = jax.lax.conv_general_dilated(
            x, w, (s, s), [(p, p), (p, p)], dimension_numbers=dn)
        return y + b.reshape(1, -1, 1, 1)

    x = conv(x_nchw, params["w1"], params["b1"], 3, 3)
    x = jnp.maximum(x, 0.0)
    x = jax.lax.reduce_window(x, -jnp.inf, jax.lax.max,
                              (1, 1, 2, 2), (1, 1, 2, 2), "VALID")
    x = conv(x, params["w2"], params["b2"], 2, 2)
    x = jax.lax.reduce_window(x, 0.0, jax.lax.add,
                              (1, 1, 3, 3), (1, 1, 3, 3), "VALID") / 9.0
    x = conv(x, params["w3"], params["b3"], 1, 1)
    x = jax.lax.reduce_window(x, -jnp.inf, jax.lax.max,
                              (1, 1, 2, 2), (1, 1, 2, 2), "VALID")
    x = x.reshape(x.shape[0], -1)
    return x @ params["wo"].T + params["bo"]


def init_params(key, parameters=8, category_number=3):
    def uni(k, shape, fan_in):
        bound = 1.0 / np.sqrt(fan_in)
        return jax.random.uniform(k, shape, jnp.float32, -bound, bound)

    ks = jax.random.split(key, 8)
    return {
        "w1": uni(ks[0], (16, 1, 5, 5), 1 * 5 * 5),
        "b1": uni(ks[1], (16,), 1 * 5 * 5),
        "w2": uni(ks[2], (32, 16, 5, 5), 16 * 5 * 5),
        "b2": uni(ks[3], (32,), 16 * 5 * 5),
        "w3": uni(ks[4], (8, 32, 3, 3), 32 * 3 * 3),
        "b3": uni(ks[5], (8,), 32 * 3 * 3),
        "wo": uni(ks[6], (category_number, parameters), parameters),
        "bo": uni(ks[7], (category_number,), parameters),
    }


if __name__ == "__main__":
    key = jax.random.PRNGKey(0)
    k_param, k_x = jax.random.split(key)

    # 64x64 input -> conv1 22 -> maxpool 11 -> conv2 6 -> avgpool 2 -> conv3 2 -> maxpool 1
    # => flattened features = 8 * 1 * 1 = 8 (the `parameters` of the Linear layer)
    batch, h, w = 2, 64, 64
    params = init_params(k_param, parameters=8, category_number=3)
    x = jax.random.normal(k_x, (batch, 1, h, w), jnp.float32)

    packed = pack_params(params)
    out = jax.block_until_ready(cnn_forward(packed, x))

    ref = jax.block_until_ready(reference_forward(params, x))
    np.testing.assert_allclose(np.asarray(out), np.asarray(ref), rtol=1e-4, atol=1e-4)

    print("KERNEL_OK")
</pallas_src>

<mosaic_0001>
module attributes {stable_mosaic.version = 11 : i64} {
  func.func @_cnn_kernel(%arg0: memref<25x1024xf32, #tpu.memory_space<vmem>>, %arg1: memref<16x25xf32, #tpu.memory_space<vmem>>, %arg2: memref<16x1xf32, #tpu.memory_space<vmem>>, %arg3: memref<2048x32xf32, #tpu.memory_space<vmem>>, %arg4: memref<1x32xf32, #tpu.memory_space<vmem>>, %arg5: memref<8x3xf32, #tpu.memory_space<vmem>>, %arg6: memref<1x3xf32, #tpu.memory_space<vmem>>, %arg7: memref<2x3xf32, #tpu.memory_space<vmem>>) attributes {dimension_semantics = [], scalar_prefetch = 0 : i64, scratch_operands = 0 : i64, tpu.core_type = #tpu.core_type<tc>} {
    %c0 = arith.constant 0 : index
    %c0_0 = arith.constant 0 : index
    %0 = vector.load %arg1[%c0, %c0_0] : memref<16x25xf32, #tpu.memory_space<vmem>>, vector<16x25xf32>
    %c0_1 = arith.constant 0 : index
    %c0_2 = arith.constant 0 : index
    %1 = vector.load %arg0[%c0_1, %c0_2] : memref<25x1024xf32, #tpu.memory_space<vmem>>, vector<25x1024xf32>
    %cst = arith.constant dense<0.000000e+00> : vector<16x1024xf32>
    %2 = tpu.matmul %0, %1, %cst {dimension_numbers = #tpu.dot_dimension_numbers<[1], [0], [0], [1], [0, 0, 1, 1], [], []>} : vector<16x25xf32>, vector<25x1024xf32>, vector<16x1024xf32> -> vector<16x1024xf32>
    %3 = vector.extract_strided_slice %2 {offsets = [0, 0], sizes = [16, 256], strides = [1, 1]} : vector<16x1024xf32> to vector<16x256xf32>
    %4 = vector.extract_strided_slice %2 {offsets = [0, 256], sizes = [16, 256], strides = [1, 1]} : vector<16x1024xf32> to vector<16x256xf32>
    %5 = arith.maximumf %3, %4 : vector<16x256xf32>
    %6 = vector.extract_strided_slice %2 {offsets = [0, 512], sizes = [16, 256], strides = [1, 1]} : vector<16x1024xf32> to vector<16x256xf32>
    %7 = vector.extract_strided_slice %2 {offsets = [0, 768], sizes = [16, 256], strides = [1, 1]} : vector<16x1024xf32> to vector<16x256xf32>
    %8 = arith.maximumf %6, %7 : vector<16x256xf32>
    %9 = arith.maximumf %5, %8 : vector<16x256xf32>
    %c0_3 = arith.constant 0 : index
    %c0_4 = arith.constant 0 : index
    %10 = vector.load %arg2[%c0_3, %c0_4] : memref<16x1xf32, #tpu.memory_space<vmem>>, vector<16x1xf32>
    %11 = vector.broadcast %10 : vector<16x1xf32> to vector<16x256xf32>
    %12 = arith.addf %9, %11 : vector<16x256xf32>
    %cst_5 = arith.constant 0.000000e+00 : f32
    %13 = vector.broadcast %cst_5 : f32 to vector<16x256xf32>
    %14 = arith.maximumf %12, %13 : vector<16x256xf32>
    %15 = vector.extract_strided_slice %14 {offsets = [0, 0], sizes = [1, 128], strides = [1, 1]} : vector<16x256xf32> to vector<1x128xf32>
    %16 = vector.extract_strided_slice %14 {offsets = [1, 0], sizes = [1, 128], strides = [1, 1]} : vector<16x256xf32> to vector<1x128xf32>
    %17 = vector.extract_strided_slice %14 {offsets = [2, 0], sizes = [1, 128], strides = [1, 1]} : vector<16x256xf32> to vector<1x128xf32>
    %18 = vector.extract_strided_slice %14 {offsets = [3, 0], sizes = [1, 128], strides = [1, 1]} : vector<16x256xf32> to vector<1x128xf32>
    %19 = vector.extract_strided_slice %14 {offsets = [4, 0], sizes = [1, 128], strides = [1, 1]} : vector<16x256xf32> to vector<1x128xf32>
    %20 = vector.extract_strided_slice %14 {offsets = [5, 0], sizes = [1, 128], strides = [1, 1]} : vector<16x256xf32> to vector<1x128xf32>
    %21 = vector.extract_strided_slice %14 {offsets = [6, 0], sizes = [1, 128], strides = [1, 1]} : vector<16x256xf32> to vector<1x128xf32>
    %22 = vector.extract_strided_slice %14 {offsets = [7, 0], sizes = [1, 128], strides = [1, 1]} : vector<16x256xf32> to vector<1x128xf32>
    %23 = vector.extract_strided_slice %14 {offsets = [8, 0], sizes = [1, 128], strides = [1, 1]} : vector<16x256xf32> to vector<1x128xf32>
    %24 = vector.extract_strided_slice %14 {offsets = [9, 0], sizes = [1, 128], strides = [1, 1]} : vector<16x256xf32> to vector<1x128xf32>
    %25 = vector.extract_strided_slice %14 {offsets = [10, 0], sizes = [1, 128], strides = [1, 1]} : vector<16x256xf32> to vector<1x128xf32>
    %26 = vector.extract_strided_slice %14 {offsets = [11, 0], sizes = [1, 128], strides = [1, 1]} : vector<16x256xf32> to vector<1x128xf32>
    %27 = vector.extract_strided_slice %14 {offsets = [12, 0], sizes = [1, 128], strides = [1, 1]} : vector<16x256xf32> to vector<1x128xf32>
    %28 = vector.extract_strided_slice %14 {offsets = [13, 0], sizes = [1, 128], strides = [1, 1]} : vector<16x256xf32> to vector<1x128xf32>
    %29 = vector.extract_strided_slice %14 {offsets = [14, 0], sizes = [1, 128], strides = [1, 1]} : vector<16x256xf32> to vector<1x128xf32>
    %30 = vector.extract_strided_slice %14 {offsets = [15, 0], sizes = [1, 128], strides = [1, 1]} : vector<16x256xf32> to vector<1x128xf32>
    %31 = tpu.concatenate %15, %16, %17, %18, %19, %20, %21, %22, %23, %24, %25, %26, %27, %28, %29, %30 in 1 : vector<1x128xf32>, vector<1x128xf32>, vector<1x128xf32>, vector<1x128xf32>, vector<1x128xf32>, vector<1x128xf32>, vector<1x128xf32>, vector<1x128xf32>, vector<1x128xf32>, vector<1x128xf32>, vector<1x128xf32>, vector<1x128xf32>, vector<1x128xf32>, vector<1x128xf32>, vector<1x128xf32>, vector<1x128xf32> -> vector<1x2048xf32>
    %32 = vector.extract_strided_slice %14 {offsets = [0, 128], sizes = [1, 128], strides = [1, 1]} : vector<16x256xf32> to vector<1x128xf32>
    %33 = vector.extract_strided_slice %14 {offsets = [1, 128], sizes = [1, 128], strides = [1, 1]} : vector<16x256xf32> to vector<1x128xf32>
    %34 = vector.extract_strided_slice %14 {offsets = [2, 128], sizes = [1, 128], strides = [1, 1]} : vector<16x256xf32> to vector<1x128xf32>
    %35 = vector.extract_strided_slice %14 {offsets = [3, 128], sizes = [1, 128], strides = [1, 1]} : vector<16x256xf32> to vector<1x128xf32>
    %36 = vector.extract_strided_slice %14 {offsets = [4, 128], sizes = [1, 128], strides = [1, 1]} : vector<16x256xf32> to vector<1x128xf32>
    %37 = vector.extract_strided_slice %14 {offsets = [5, 128], sizes = [1, 128], strides = [1, 1]} : vector<16x256xf32> to vector<1x128xf32>
    %38 = vector.extract_strided_slice %14 {offsets = [6, 128], sizes = [1, 128], strides = [1, 1]} : vector<16x256xf32> to vector<1x128xf32>
    %39 = vector.extract_strided_slice %14 {offsets = [7, 128], sizes = [1, 128], strides = [1, 1]} : vector<16x256xf32> to vector<1x128xf32>
    %40 = vector.extract_strided_slice %14 {offsets = [8, 128], sizes = [1, 128], strides = [1, 1]} : vector<16x256xf32> to vector<1x128xf32>
    %41 = vector.extract_strided_slice %14 {offsets = [9, 128], sizes = [1, 128], strides = [1, 1]} : vector<16x256xf32> to vector<1x128xf32>
    %42 = vector.extract_strided_slice %14 {offsets = [10, 128], sizes = [1, 128], strides = [1, 1]} : vector<16x256xf32> to vector<1x128xf32>
    %43 = vector.extract_strided_slice %14 {offsets = [11, 128], sizes = [1, 128], strides = [1, 1]} : vector<16x256xf32> to vector<1x128xf32>
    %44 = vector.extract_strided_slice %14 {offsets = [12, 128], sizes = [1, 128], strides = [1, 1]} : vector<16x256xf32> to vector<1x128xf32>
    %45 = vector.extract_strided_slice %14 {offsets = [13, 128], sizes = [1, 128], strides = [1, 1]} : vector<16x256xf32> to vector<1x128xf32>
    %46 = vector.extract_strided_slice %14 {offsets = [14, 128], sizes = [1, 128], strides = [1, 1]} : vector<16x256xf32> to vector<1x128xf32>
    %47 = vector.extract_strided_slice %14 {offsets = [15, 128], sizes = [1, 128], strides = [1, 1]} : vector<16x256xf32> to vector<1x128xf32>
    %48 = tpu.concatenate %32, %33, %34, %35, %36, %37, %38, %39, %40, %41, %42, %43, %44, %45, %46, %47 in 1 : vector<1x128xf32>, vector<1x128xf32>, vector<1x128xf32>, vector<1x128xf32>, vector<1x128xf32>, vector<1x128xf32>, vector<1x128xf32>, vector<1x128xf32>, vector<1x128xf32>, vector<1x128xf32>, vector<1x128xf32>, vector<1x128xf32>, vector<1x128xf32>, vector<1x128xf32>, vector<1x128xf32>, vector<1x128xf32> -> vector<1x2048xf32>
    %49 = tpu.concatenate %31, %48 in 0 : vector<1x2048xf32>, vector<1x2048xf32> -> vector<2x2048xf32>
    %c0_6 = arith.constant 0 : index
    %c0_7 = arith.constant 0 : index
    %50 = vector.load %arg3[%c0_6, %c0_7] : memref<2048x32xf32, #tpu.memory_space<vmem>>, vector<2048x32xf32>
    %cst_8 = arith.constant dense<0.000000e+00> : vector<2x32xf32>
    %51 = tpu.matmul %49, %50, %cst_8 {dimension_numbers = #tpu.dot_dimension_numbers<[1], [0], [0], [1], [0, 0, 1, 1], [], []>} : vector<2x2048xf32>, vector<2048x32xf32>, vector<2x32xf32> -> vector<2x32xf32>
    %c0_9 = arith.constant 0 : index
    %c0_10 = arith.constant 0 : index
    %52 = vector.load %arg4[%c0_9, %c0_10] : memref<1x32xf32, #tpu.memory_space<vmem>>, vector<1x32xf32>
    %53 = vector.broadcast %52 : vector<1x32xf32> to vector<2x32xf32>
    %54 = arith.addf %51, %53 : vector<2x32xf32>
    %55 = vector.extract_strided_slice %54 {offsets = [0, 0], sizes = [2, 8], strides = [1, 1]} : vector<2x32xf32> to vector<2x8xf32>
    %56 = vector.extract_strided_slice %54 {offsets = [0, 8], sizes = [2, 8], strides = [1, 1]} : vector<2x32xf32> to vector<2x8xf32>
    %57 = arith.maximumf %55, %56 : vector<2x8xf32>
    %58 = vector.extract_strided_slice %54 {offsets = [0, 16], sizes = [2, 8], strides = [1, 1]} : vector<2x32xf32> to vector<2x8xf32>
    %59 = arith.maximumf %57, %58 : vector<2x8xf32>
    %60 = vector.extract_strided_slice %54 {offsets = [0, 24], sizes = [2, 8], strides = [1, 1]} : vector<2x32xf32> to vector<2x8xf32>
    %61 = arith.maximumf %59, %60 : vector<2x8xf32>
    %c0_11 = arith.constant 0 : index
    %c0_12 = arith.constant 0 : index
    %62 = vector.load %arg5[%c0_11, %c0_12] : memref<8x3xf32, #tpu.memory_space<vmem>>, vector<8x3xf32>
    %cst_13 = arith.constant dense<0.000000e+00> : vector<2x3xf32>
    %63 = tpu.matmul %61, %62, %cst_13 {dimension_numbers = #tpu.dot_dimension_numbers<[1], [0], [0], [1], [0, 0, 1, 1], [], []>} : vector<2x8xf32>, vector<8x3xf32>, vector<2x3xf32> -> vector<2x3xf32>
    %c0_14 = arith.constant 0 : index
    %c0_15 = arith.constant 0 : index
    %64 = vector.load %arg6[%c0_14, %c0_15] : memref<1x3xf32, #tpu.memory_space<vmem>>, vector<1x3xf32>
    %65 = vector.broadcast %64 : vector<1x3xf32> to vector<2x3xf32>
    %66 = arith.addf %63, %65 : vector<2x3xf32>
    %c0_16 = arith.constant 0 : index
    %c0_17 = arith.constant 0 : index
    %67 = vector.load %arg7[%c0_16, %c0_17] : memref<2x3xf32, #tpu.memory_space<vmem>>, vector<2x3xf32>
    tpu.vector_store %arg7[%c0_16, %c0_17], %66 {strides = array<i32>} : memref<2x3xf32, #tpu.memory_space<vmem>>, vector<2x3xf32>,
    return
  }
}

</mosaic_0001>

<bundles_post_ra>
// kernel: cnn_forward.1
= control target key start
LH: loop header
LB: loop body
LE: loop exit
PB: predicated region body
PF: predicated region fallthrough
CT: control target
= control target key end

     0   :  { %vm68_vm0 = vcmask 1040384   ;;  %v1112_v8 = vmov 0   ;;  %vm61_vm1 = vcmask 203776   ;;  %s2159_s0 = inlined_call_operand.vmem [shape: f32[25,1024], index: 0, kind: input, shape index: {}]   ;;  %s2160_s1 = inlined_call_operand.vmem [shape: f32[16,25], index: 1, kind: input, shape index: {}]   ;;  %s2161_s2 = inlined_call_operand.vmem [shape: f32[16,1], index: 2, kind: input, shape index: {}]   ;;  %s2162_s3 = inlined_call_operand.vmem [shape: f32[2048,32], index: 3, kind: input, shape index: {}]   ;;  %s2163_s4 = inlined_call_operand.vmem [shape: f32[1,32], index: 4, kind: input, shape index: {}]   ;;  %s2164_s5 = inlined_call_operand.vmem [shape: f32[8,3], index: 5, kind: input, shape index: {}]   ;;  %s2165_s6 = inlined_call_operand.vmem [shape: f32[1,3], index: 6, kind: input, shape index: {}]   ;;  %s2166_s7 = inlined_call_operand.hbm [shape: f32[2,3], index: 7, kind: output, shape index: {}]  }
   0x1   :  { %v55_v0 = vld [vmem:[%s2159_s0 + $0xd0] sm:$0x1]  ;;  %v56_v1 = vld [vmem:[%s2159_s0 + $0xd8] sm:$0x1]  ;;  %v53_v6 = vld [vmem:[%s2159_s0 + $0xc0] sm:$0x1]  ;;  %1083 = vset.pattern.permute.xlu0 %v1112_v8 }
   0x2   :  { %v47_v2 = vld [vmem:[%s2159_s0 + $0x90] sm:$0xff]  ;;  %1047 = vmatpush.msk.msra.mxu2 %vm68_vm0, %v55_v0  ;;  %1050 = vmatpush.msk.msra.mxu3 %vm68_vm0, %v56_v1  ;;  %v48_v3 = vld [vmem:[%s2159_s0 + $0x98] sm:$0xff]  ;;  %v54_v7 = vld [vmem:[%s2159_s0 + $0xc8] sm:$0x1] }
   0x3   :  { %v39_v4 = vld [vmem:[%s2159_s0 + $0x50] sm:$0xff]  ;;  %v40_v5 = vld [vmem:[%s2159_s0 + $0x58] sm:$0xff]  ;;  %v45_v9 = vld [vmem:[%s2159_s0 + $0x80] sm:$0xff]  ;;  %1041 = vmatpush.msk.msra.mxu0 %vm68_vm0, %v53_v6  ;;  %1044 = vmatpush.msk.msra.mxu1 %vm68_vm0, %v54_v7 }
   0x4   :  { %152 = vmatpush.msra.mxu2 %v47_v2  ;;  %175 = vmatpush.msra.mxu3 %v48_v3  ;;  %v31_v10 = vld [vmem:[%s2159_s0 + $0x10] sm:$0xff]  ;;  %v32_v11 = vld [vmem:[%s2159_s0 + $0x18] sm:$0xff]  ;;  %v46_v12 = vld [vmem:[%s2159_s0 + $0x88] sm:$0xff] }
   0x5   :  { %v1200_v13 = vld [vmem:[%s2160_s1] sm:$0xff]  ;;  %106 = vmatpush.msra.mxu0 %v45_v9  ;;  %129 = vmatpush.msra.mxu1 %v46_v12  ;;  %v38_v15 = vld [vmem:[%s2159_s0 + $0x48] sm:$0xff]  ;;  %v59_v16 = vld [vmem:[%s2159_s0 + $0xf0] sm:$0x1] }
   0x6   :  { %153 = vmatpush.msra.mxu2 %v39_v4  ;;  %176 = vmatpush.msra.mxu3 %v40_v5  ;;  %v37_v14 = vld [vmem:[%s2159_s0 + $0x40] sm:$0xff]  ;;  %v60_v17 = vld [vmem:[%s2159_s0 + $0xf8] sm:$0x1]  ;;  %v30_v19 = vld [vmem:[%s2159_s0 + $0x8] sm:$0xff] }
   0x7   :  { %v29_v18 = vld [vmem:[%s2159_s0] sm:$0xff]  ;;  %107 = vmatpush.msra.mxu0 %v37_v14  ;;  %130 = vmatpush.msra.mxu1 %v38_v15  ;;  %v51_v20 = vld [vmem:[%s2159_s0 + $0xb0] sm:$0xff]  ;;  %v52_v21 = vld [vmem:[%s2159_s0 + $0xb8] sm:$0xff] }
   0x8   :  { %154 = vmatpush.msra.mxu2 %v31_v10  ;;  %177 = vmatpush.msra.mxu3 %v32_v11  ;;  %v57_v22 = vld [vmem:[%s2159_s0 + $0xe0] sm:$0x1]  ;;  %v58_v23 = vld [vmem:[%s2159_s0 + $0xe8] sm:$0x1]  ;;  %v43_v24 = vld [vmem:[%s2159_s0 + $0x70] sm:$0xff] }
   0x9   :  { %1048 = vmatmul.msk.f32.vlgmr.msra.gmra.mxu2 %vm61_vm1, %v1200_v13  ;;  %1051 = vmatmul.msk.f32.vlgmr.msra.gmra.mxu3 %vm61_vm1, %v1200_v13  ;;  %v44_v25 = vld [vmem:[%s2159_s0 + $0x78] sm:$0xff]  ;;  %v1251_v26 = vld [vmem:[%s2160_s1 + $0x8] sm:$0xff]  ;;  %v35_v27 = vld [vmem:[%s2159_s0 + $0x30] sm:$0xff] }
   0xa   :  { %1059 = vmatpush.msk.msrb.mxu2 %vm68_vm0, %v59_v16  ;;  %1062 = vmatpush.msk.msrb.mxu3 %vm68_vm0, %v60_v17  ;;  %v36_v28 = vld [vmem:[%s2159_s0 + $0x38] sm:$0xff]  ;;  %v49_v29 = vld [vmem:[%s2159_s0 + $0xa0] sm:$0xff]  ;;  %v50_v30 = vld [vmem:[%s2159_s0 + $0xa8] sm:$0xff] }
   0xb   :  { %108 = vmatpush.msra.mxu0 %v29_v18  ;;  %131 = vmatpush.msra.mxu1 %v30_v19  ;;  %v289_v31 = vld [vmem:[%s2161_s2] sm:$0xff]  ;;  %v448_v32 = vld [vmem:[%s2162_s3 + $0x178] sm:$0xff]  ;;  %v42_v34 = vld [vmem:[%s2159_s0 + $0x68] sm:$0xff] }
   0xc   :  { %1042 = vmatmul.msk.f32.vlgmr.msra.gmra.mxu0 %vm61_vm1, %v1200_v13  ;;  %1045 = vmatmul.msk.f32.vlgmr.msra.gmra.mxu1 %vm61_vm1, %v1200_v13  ;;  %v41_v33 = vld [vmem:[%s2159_s0 + $0x60] sm:$0xff]  ;;  %v464_v35 = vld [vmem:[%s2162_s3 + $0x1f8] sm:$0xff]  ;;  %v447_v36 = vld [vmem:[%s2162_s3 + $0x170] sm:$0xff] }
   0xd   :  { %244 = vmatpush.msrb.mxu2 %v51_v20  ;;  %267 = vmatpush.msrb.mxu3 %v52_v21  ;;  %v33_v37 = vld [vmem:[%s2159_s0 + $0x20] sm:$0xff]  ;;  %v34_v38 = vld [vmem:[%s2159_s0 + $0x28] sm:$0xff]  ;;  %v416_v39 = vld [vmem:[%s2162_s3 + $0x78] sm:$0xff] }
   0xe   :  { %1053 = vmatpush.msk.msrb.mxu0 %vm68_vm0, %v57_v22  ;;  %1056 = vmatpush.msk.msrb.mxu1 %vm68_vm0, %v58_v23  ;;  %v432_v40 = vld [vmem:[%s2162_s3 + $0xf8] sm:$0xff]  ;;  %v463_v41 = vld [vmem:[%s2162_s3 + $0x1f0] sm:$0xff]  ;;  %v446_v42 = vld [vmem:[%s2162_s3 + $0x168] sm:$0xff] }
   0xf   :  { %245 = vmatpush.msrb.mxu2 %v43_v24  ;;  %268 = vmatpush.msrb.mxu3 %v44_v25  ;;  %v290_v43 = vld [vmem:[%s2161_s2 + $0x8] sm:$0xff]  ;;  %v415_v44 = vld [vmem:[%s2162_s3 + $0x70] sm:$0xff]  ;;  %v445_v48 = vld [vmem:[%s2162_s3 + $0x160] sm:$0xff] }
  0x10   :  { %198 = vmatpush.msrb.mxu0 %v49_v29  ;;  %221 = vmatpush.msrb.mxu1 %v50_v30  ;;  %v431_v45 = vld [vmem:[%s2162_s3 + $0xf0] sm:$0xff]  ;;  %v414_v46 = vld [vmem:[%s2162_s3 + $0x68] sm:$0xff]  ;;  %v413_v50 = vld [vmem:[%s2162_s3 + $0x60] sm:$0xff] }
  0x11   :  { %1049 = vmatmul.msk.f32.gmra.mxu2 %vm61_vm1, %v1251_v26  ;;  %1052 = vmatmul.msk.f32.gmra.mxu3 %vm61_vm1, %v1251_v26  ;;  %v462_v47 = vld [vmem:[%s2162_s3 + $0x1e8] sm:$0xff]  ;;  %v429_v51 = vld [vmem:[%s2162_s3 + $0xe0] sm:$0xff]  ;;  %v412_v53 = vld [vmem:[%s2162_s3 + $0x58] sm:$0xff] }
  0x12   :  { %246 = vmatpush.msrb.mxu2 %v35_v27  ;;  %269 = vmatpush.msrb.mxu3 %v36_v28  ;;  %v430_v49 = vld [vmem:[%s2162_s3 + $0xe8] sm:$0xff]  ;;  %v461_v52 = vld [vmem:[%s2162_s3 + $0x1e0] sm:$0xff]  ;;  %v444_v54 = vld [vmem:[%s2162_s3 + $0x158] sm:$0xff] }
  0x13   :  { %293 = vperm.xlu0 %1083, %v289_v31   ;;  %199 = vmatpush.msrb.mxu0 %v41_v33  ;;  %v428_v55 = vld [vmem:[%s2162_s3 + $0xd8] sm:$0xff]  ;;  %v411_v57 = vld [vmem:[%s2162_s3 + $0x50] sm:$0xff]  ;;  %v410_v61 = vld [vmem:[%s2162_s3 + $0x48] sm:$0xff] }
  0x14   :  { %701 = vmatpush.msra.mxu2 %v448_v32  ;;  %1043 = vmatmul.msk.f32.gmra.mxu0 %vm61_vm1, %v1251_v26  ;;  %v460_v56 = vld [vmem:[%s2162_s3 + $0x1d8] sm:$0xff]  ;;  %v427_v58 = vld [vmem:[%s2162_s3 + $0xd0] sm:$0xff]  ;;  %v426_v62 = vld [vmem:[%s2162_s3 + $0xc8] sm:$0xff] }
  0x15   :  { %1046 = vmatmul.msk.f32.gmra.mxu1 %vm61_vm1, %v1251_v26  ;;  %721 = vmatpush.msra.mxu3 %v464_v35  ;;  %v443_v59 = vld [vmem:[%s2162_s3 + $0x150] sm:$0xff] }
  0x16   :  { %222 = vmatpush.msrb.mxu1 %v42_v34  ;;  %702 = vmatpush.msra.mxu2 %v447_v36  ;;  %v459_v60 = vld [vmem:[%s2162_s3 + $0x1d0] sm:$0xff] }
  0x17   :  { %200 = vmatpush.msrb.mxu0 %v33_v37  ;;  %722 = vmatpush.msra.mxu3 %v463_v41 }
  0x18   :  { %223 = vmatpush.msrb.mxu1 %v34_v38  ;;  %703 = vmatpush.msra.mxu2 %v446_v42 }
  0x19   :  { %1060 = vmatmul.msk.f32.vlgmr.msrb.gmra.mxu2 %vm61_vm1, %v1200_v13  ;;  %1063 = vmatmul.msk.f32.vlgmr.msrb.gmra.mxu3 %vm61_vm1, %v1200_v13 }
  0x1a   :  { %661 = vmatpush.msra.mxu0 %v416_v39  ;;  %681 = vmatpush.msra.mxu1 %v432_v40 }
  0x1b   :  { %298 = vperm.xlu0 %1083, %v290_v43   ;;  %723 = vmatpush.msra.mxu3 %v462_v47 }
  0x1c   :  { %662 = vmatpush.msra.mxu0 %v415_v44  ;;  %682 = vmatpush.msra.mxu1 %v431_v45 }
  0x1d   :  { %1054 = vmatmul.msk.f32.vlgmr.msrb.gmra.mxu0 %vm61_vm1, %v1200_v13  ;;  %1057 = vmatmul.msk.f32.vlgmr.msrb.gmra.mxu1 %vm61_vm1, %v1200_v13 }
  0x1e   :  { %663 = vmatpush.msra.mxu0 %v414_v46  ;;  %704 = vmatpush.msra.mxu2 %v445_v48 }
  0x1f   :  { %683 = vmatpush.msra.mxu1 %v430_v49  ;;  %724 = vmatpush.msra.mxu3 %v461_v52 }
  0x20   :  { %664 = vmatpush.msra.mxu0 %v413_v50  ;;  %705 = vmatpush.msra.mxu2 %v444_v54 }
  0x21   :  { %1061 = vmatmul.msk.f32.gmra.mxu2 %vm61_vm1, %v1251_v26  ;;  %1064 = vmatmul.msk.f32.gmra.mxu3 %vm61_vm1, %v1251_v26 }
  0x22   :  { %684 = vmatpush.msra.mxu1 %v429_v51  ;;  %665 = vmatpush.msra.mxu0 %v412_v53 }
  0x23   :  { %725 = vmatpush.msra.mxu3 %v460_v56 }
  0x24   :  { %685 = vmatpush.msra.mxu1 %v428_v55 }
  0x25   :  { %1055 = vmatmul.msk.f32.gmra.mxu0 %vm61_vm1, %v1251_v26  ;;  %1058 = vmatmul.msk.f32.gmra.mxu1 %vm61_vm1, %v1251_v26 }
  0x26   :  { %12 = vsyncpa [#allocation3], 0  ;;  %666 = vmatpush.msra.mxu0 %v411_v57  ;;  %686 = vmatpush.msra.mxu1 %v427_v58  ;;  %v442_v63 = vld [vmem:[%s2162_s3 + $0x148] sm:$0xff]  ;;  %v409_v1 = vld [vmem:[%s2162_s3 + $0x40] sm:$0xff]  ;;  %s1114_s20 = smov 120   ;;  %s1115_s21 = smov 112  }
  0x27   :  { %v458_v0 = vld [vmem:[%s2162_s3 + $0x1c8] sm:$0xff]  ;;  %706 = vmatpush.msra.mxu2 %v443_v59  ;;  %726 = vmatpush.msra.mxu3 %v459_v60  ;;  %v425_v2 = vld [vmem:[%s2162_s3 + $0xc0] sm:$0xff]  ;;  %v408_v5 = vld [vmem:[%s2162_s3 + $0x38] sm:$0xff]  ;;  %vm999_vm2 = vcmask 64512   ;;  %s1116_s25 = smov [#allocation2]   ;;  %s1032_s29 = sshll.u32 %s2166_s7, 4  ;;  %s1033_s29 = int_to_ptr.hbm [resolvable:$true] %s1032_s29 }
  0x28   :  { %667 = vmatpush.msra.mxu0 %v410_v61  ;;  %687 = vmatpush.msra.mxu1 %v426_v62  ;;  %v441_v3 = vld [vmem:[%s2162_s3 + $0x140] sm:$0xff]  ;;  %v424_v6 = vld [vmem:[%s2162_s3 + $0xb8] sm:$0xff]  ;;  %v407_v9 = vld [vmem:[%s2162_s3 + $0x30] sm:$0xff]  ;;  %s1030_s26 = sshll.u32 %s1116_s25, 4  ;;  %vm1023_vm3 = vcmask 17408   ;;  %s1031_s26 = int_to_ptr.vmem [resolvable:$true] %s1030_s26 }
  0x29   :  { %v457_v4 = vld [vmem:[%s2162_s3 + $0x1c0] sm:$0xff]  ;;  %707 = vmatpush.msra.mxu2 %v442_v63  ;;  %727 = vmatpush.msra.mxu3 %v458_v0  ;;  %v440_v7 = vld [vmem:[%s2162_s3 + $0x138] sm:$0xff]  ;;  %v423_v10 = vld [vmem:[%s2162_s3 + $0xb0] sm:$0xff] }
  0x2a   :  { %668 = vmatpush.msra.mxu0 %v409_v1  ;;  %688 = vmatpush.msra.mxu1 %v425_v2  ;;  %v456_v8 = vld [vmem:[%s2162_s3 + $0x1b8] sm:$0xff]  ;;  %v439_v11 = vld [vmem:[%s2162_s3 + $0x130] sm:$0xff]  ;;  %v406_v13 = vld [vmem:[%s2162_s3 + $0x28] sm:$0xff] }
  0x2b   :  { %708 = vmatpush.msra.mxu2 %v441_v3  ;;  %728 = vmatpush.msra.mxu3 %v457_v4  ;;  %v455_v12 = vld [vmem:[%s2162_s3 + $0x1b0] sm:$0xff]  ;;  %v422_v14 = vld [vmem:[%s2162_s3 + $0xa8] sm:$0xff]  ;;  %v405_v17 = vld [vmem:[%s2162_s3 + $0x20] sm:$0xff] }
  0x2c   :  { %669 = vmatpush.msra.mxu0 %v408_v5  ;;  %689 = vmatpush.msra.mxu1 %v424_v6  ;;  %v438_v15 = vld [vmem:[%s2162_s3 + $0x128] sm:$0xff]  ;;  %v421_v18 = vld [vmem:[%s2162_s3 + $0xa0] sm:$0xff]  ;;  %v404_v21 = vld [vmem:[%s2162_s3 + $0x18] sm:$0xff] }
  0x2d   :  { %709 = vmatpush.msra.mxu2 %v440_v7  ;;  %729 = vmatpush.msra.mxu3 %v456_v8  ;;  %v454_v16 = vld [vmem:[%s2162_s3 + $0x1a8] sm:$0xff]  ;;  %v437_v19 = vld [vmem:[%s2162_s3 + $0x120] sm:$0xff]  ;;  %v420_v22 = vld [vmem:[%s2162_s3 + $0x98] sm:$0xff] }
  0x2e   :  { %670 = vmatpush.msra.mxu0 %v407_v9  ;;  %690 = vmatpush.msra.mxu1 %v423_v10  ;;  %v453_v20 = vld [vmem:[%s2162_s3 + $0x1a0] sm:$0xff]  ;;  %v436_v23 = vld [vmem:[%s2162_s3 + $0x118] sm:$0xff]  ;;  %v403_v25 = vld [vmem:[%s2162_s3 + $0x10] sm:$0xff] }
  0x2f   :  { %710 = vmatpush.msra.mxu2 %v439_v11  ;;  %730 = vmatpush.msra.mxu3 %v455_v12  ;;  %v452_v24 = vld [vmem:[%s2162_s3 + $0x198] sm:$0xff]  ;;  %v419_v26 = vld [vmem:[%s2162_s3 + $0x90] sm:$0xff]  ;;  %v402_v29 = vld [vmem:[%s2162_s3 + $0x8] sm:$0xff] }
  0x30   :  { %671 = vmatpush.msra.mxu0 %v406_v13  ;;  %691 = vmatpush.msra.mxu1 %v422_v14  ;;  %v435_v27 = vld [vmem:[%s2162_s3 + $0x110] sm:$0xff]  ;;  %v418_v30 = vld [vmem:[%s2162_s3 + $0x88] sm:$0xff]  ;;  %v401_v33 = vld [vmem:[%s2162_s3] sm:$0xff] }
  0x31   :  { %711 = vmatpush.msra.mxu2 %v438_v15  ;;  %731 = vmatpush.msra.mxu3 %v454_v16  ;;  %v451_v28 = vld [vmem:[%s2162_s3 + $0x190] sm:$0xff]  ;;  %v434_v31 = vld [vmem:[%s2162_s3 + $0x108] sm:$0xff]  ;;  %v417_v34 = vld [vmem:[%s2162_s3 + $0x80] sm:$0xff] }
  0x32   :  { %672 = vmatpush.msra.mxu0 %v405_v17  ;;  %692 = vmatpush.msra.mxu1 %v421_v18  ;;  %v450_v32 = vld [vmem:[%s2162_s3 + $0x188] sm:$0xff]  ;;  %v433_v35 = vld [vmem:[%s2162_s3 + $0x100] sm:$0xff]  ;;  %v480_v37 = vld [vmem:[%s2162_s3 + $0x278] sm:$0xff] }
  0x33   :  { %712 = vmatpush.msra.mxu2 %v437_v19  ;;  %732 = vmatpush.msra.mxu3 %v453_v20  ;;  %v449_v36 = vld [vmem:[%s2162_s3 + $0x180] sm:$0xff]  ;;  %v496_v38 = vld [vmem:[%s2162_s3 + $0x2f8] sm:$0xff]  ;;  %v479_v41 = vld [vmem:[%s2162_s3 + $0x270] sm:$0xff] }
  0x34   :  { %673 = vmatpush.msra.mxu0 %v404_v21  ;;  %693 = vmatpush.msra.mxu1 %v420_v22  ;;  %v512_v39 = vld [vmem:[%s2162_s3 + $0x378] sm:$0xff]  ;;  %v495_v42 = vld [vmem:[%s2162_s3 + $0x2f0] sm:$0xff]  ;;  %v478_v45 = vld [vmem:[%s2162_s3 + $0x268] sm:$0xff] }
  0x35   :  { %713 = vmatpush.msra.mxu2 %v436_v23  ;;  %733 = vmatpush.msra.mxu3 %v452_v24  ;;  %v528_v40 = vld [vmem:[%s2162_s3 + $0x3f8] sm:$0xff]  ;;  %v511_v43 = vld [vmem:[%s2162_s3 + $0x370] sm:$0xff]  ;;  %v494_v46 = vld [vmem:[%s2162_s3 + $0x2e8] sm:$0xff] }
  0x36   :  { %674 = vmatpush.msra.mxu0 %v403_v25  ;;  %694 = vmatpush.msra.mxu1 %v419_v26  ;;  %v527_v44 = vld [vmem:[%s2162_s3 + $0x3f0] sm:$0xff]  ;;  %v510_v47 = vld [vmem:[%s2162_s3 + $0x368] sm:$0xff]  ;;  %v477_v49 = vld [vmem:[%s2162_s3 + $0x260] sm:$0xff] }
  0x37   :  { %714 = vmatpush.msra.mxu2 %v435_v27  ;;  %734 = vmatpush.msra.mxu3 %v451_v28  ;;  %v526_v48 = vld [vmem:[%s2162_s3 + $0x3e8] sm:$0xff]  ;;  %v493_v50 = vld [vmem:[%s2162_s3 + $0x2e0] sm:$0xff]  ;;  %v476_v53 = vld [vmem:[%s2162_s3 + $0x258] sm:$0xff] }
  0x38   :  { %675 = vmatpush.msra.mxu0 %v402_v29  ;;  %695 = vmatpush.msra.mxu1 %v418_v30  ;;  %v509_v51 = vld [vmem:[%s2162_s3 + $0x360] sm:$0xff]  ;;  %v492_v54 = vld [vmem:[%s2162_s3 + $0x2d8] sm:$0xff]  ;;  %v475_v57 = vld [vmem:[%s2162_s3 + $0x250] sm:$0xff] }
  0x39   :  { %715 = vmatpush.msra.mxu2 %v434_v31  ;;  %735 = vmatpush.msra.mxu3 %v450_v32  ;;  %v525_v52 = vld [vmem:[%s2162_s3 + $0x3e0] sm:$0xff]  ;;  %v508_v55 = vld [vmem:[%s2162_s3 + $0x358] sm:$0xff]  ;;  %v491_v58 = vld [vmem:[%s2162_s3 + $0x2d0] sm:$0xff] }
  0x3a   :  { %676 = vmatpush.msra.mxu0 %v401_v33  ;;  %696 = vmatpush.msra.mxu1 %v417_v34  ;;  %v524_v56 = vld [vmem:[%s2162_s3 + $0x3d8] sm:$0xff]  ;;  %v507_v59 = vld [vmem:[%s2162_s3 + $0x350] sm:$0xff]  ;;  %v474_v61 = vld [vmem:[%s2162_s3 + $0x248] sm:$0xff] }
  0x3b   :  { %716 = vmatpush.msra.mxu2 %v433_v35  ;;  %736 = vmatpush.msra.mxu3 %v449_v36  ;;  %v523_v60 = vld [vmem:[%s2162_s3 + $0x3d0] sm:$0xff]  ;;  %v490_v62 = vld [vmem:[%s2162_s3 + $0x2c8] sm:$0xff]  ;;  %v473_v1 = vld [vmem:[%s2162_s3 + $0x240] sm:$0xff] }
  0x3c   :  { %741 = vmatpush.msrb.mxu0 %v480_v37  ;;  %761 = vmatpush.msrb.mxu1 %v496_v38  ;;  %v506_v63 = vld [vmem:[%s2162_s3 + $0x348] sm:$0xff]  ;;  %v489_v2 = vld [vmem:[%s2162_s3 + $0x2c0] sm:$0xff]  ;;  %v472_v5 = vld [vmem:[%s2162_s3 + $0x238] sm:$0xff] }
  0x3d   :  { %781 = vmatpush.msrb.mxu2 %v512_v39  ;;  %801 = vmatpush.msrb.mxu3 %v528_v40  ;;  %v522_v0 = vld [vmem:[%s2162_s3 + $0x3c8] sm:$0xff]  ;;  %v505_v3 = vld [vmem:[%s2162_s3 + $0x340] sm:$0xff]  ;;  %v488_v6 = vld [vmem:[%s2162_s3 + $0x2b8] sm:$0xff] }
  0x3e   :  { %742 = vmatpush.msrb.mxu0 %v479_v41  ;;  %762 = vmatpush.msrb.mxu1 %v495_v42  ;;  %v521_v4 = vld [vmem:[%s2162_s3 + $0x3c0] sm:$0xff]  ;;  %v504_v7 = vld [vmem:[%s2162_s3 + $0x338] sm:$0xff]  ;;  %v471_v9 = vld [vmem:[%s2162_s3 + $0x230] sm:$0xff] }
  0x3f   :  { %782 = vmatpush.msrb.mxu2 %v511_v43  ;;  %802 = vmatpush.msrb.mxu3 %v527_v44  ;;  %v520_v8 = vld [vmem:[%s2162_s3 + $0x3b8] sm:$0xff]  ;;  %v487_v10 = vld [vmem:[%s2162_s3 + $0x2b0] sm:$0xff]  ;;  %v470_v13 = vld [vmem:[%s2162_s3 + $0x228] sm:$0xff] }
  0x40   :  { %743 = vmatpush.msrb.mxu0 %v478_v45  ;;  %763 = vmatpush.msrb.mxu1 %v494_v46  ;;  %v503_v11 = vld [vmem:[%s2162_s3 + $0x330] sm:$0xff]  ;;  %v486_v14 = vld [vmem:[%s2162_s3 + $0x2a8] sm:$0xff]  ;;  %v469_v17 = vld [vmem:[%s2162_s3 + $0x220] sm:$0xff] }
  0x41   :  { %783 = vmatpush.msrb.mxu2 %v510_v47  ;;  %803 = vmatpush.msrb.mxu3 %v526_v48  ;;  %v519_v12 = vld [vmem:[%s2162_s3 + $0x3b0] sm:$0xff]  ;;  %v502_v15 = vld [vmem:[%s2162_s3 + $0x328] sm:$0xff]  ;;  %v485_v18 = vld [vmem:[%s2162_s3 + $0x2a0] sm:$0xff] }
  0x42   :  { %744 = vmatpush.msrb.mxu0 %v477_v49  ;;  %764 = vmatpush.msrb.mxu1 %v493_v50  ;;  %v518_v16 = vld [vmem:[%s2162_s3 + $0x3a8] sm:$0xff]  ;;  %v501_v19 = vld [vmem:[%s2162_s3 + $0x320] sm:$0xff]  ;;  %v468_v21 = vld [vmem:[%s2162_s3 + $0x218] sm:$0xff] }
  0x43   :  { %784 = vmatpush.msrb.mxu2 %v509_v51  ;;  %804 = vmatpush.msrb.mxu3 %v525_v52  ;;  %v517_v20 = vld [vmem:[%s2162_s3 + $0x3a0] sm:$0xff]  ;;  %v484_v22 = vld [vmem:[%s2162_s3 + $0x298] sm:$0xff]  ;;  %v467_v25 = vld [vmem:[%s2162_s3 + $0x210] sm:$0xff] }
  0x44   :  { %745 = vmatpush.msrb.mxu0 %v476_v53  ;;  %765 = vmatpush.msrb.mxu1 %v492_v54  ;;  %v500_v23 = vld [vmem:[%s2162_s3 + $0x318] sm:$0xff]  ;;  %v483_v26 = vld [vmem:[%s2162_s3 + $0x290] sm:$0xff]  ;;  %v466_v29 = vld [vmem:[%s2162_s3 + $0x208] sm:$0xff] }
  0x45   :  { %785 = vmatpush.msrb.mxu2 %v508_v55  ;;  %805 = vmatpush.msrb.mxu3 %v524_v56  ;;  %v516_v24 = vld [vmem:[%s2162_s3 + $0x398] sm:$0xff]  ;;  %v499_v27 = vld [vmem:[%s2162_s3 + $0x310] sm:$0xff]  ;;  %v482_v30 = vld [vmem:[%s2162_s3 + $0x288] sm:$0xff] }
  0x46   :  { %746 = vmatpush.msrb.mxu0 %v475_v57  ;;  %766 = vmatpush.msrb.mxu1 %v491_v58  ;;  %v515_v28 = vld [vmem:[%s2162_s3 + $0x390] sm:$0xff]  ;;  %v498_v31 = vld [vmem:[%s2162_s3 + $0x308] sm:$0xff]  ;;  %v465_v33 = vld [vmem:[%s2162_s3 + $0x200] sm:$0xff] }
  0x47   :  { %786 = vmatpush.msrb.mxu2 %v507_v59  ;;  %806 = vmatpush.msrb.mxu3 %v523_v60  ;;  %v514_v32 = vld [vmem:[%s2162_s3 + $0x388] sm:$0xff]  ;;  %v481_v34 = vld [vmem:[%s2162_s3 + $0x280] sm:$0xff] }
  0x48   :  { %747 = vmatpush.msrb.mxu0 %v474_v61  ;;  %767 = vmatpush.msrb.mxu1 %v490_v62  ;;  %v497_v35 = vld [vmem:[%s2162_s3 + $0x300] sm:$0xff] }
  0x49   :  { %787 = vmatpush.msrb.mxu2 %v506_v63  ;;  %807 = vmatpush.msrb.mxu3 %v522_v0  ;;  %v513_v36 = vld [vmem:[%s2162_s3 + $0x380] sm:$0xff] }
  0x4a   :  { %748 = vmatpush.msrb.mxu0 %v473_v1  ;;  %768 = vmatpush.msrb.mxu1 %v489_v2 }
  0x4b   :  { %788 = vmatpush.msrb.mxu2 %v505_v3  ;;  %808 = vmatpush.msrb.mxu3 %v521_v4  ;;  %v544_v4 = vld [vmem:[%s2162_s3 + $0x478] sm:$0xff] }
  0x4c   :  { %749 = vmatpush.msrb.mxu0 %v472_v5  ;;  %769 = vmatpush.msrb.mxu1 %v488_v6  ;;  %v560_v5 = vld [vmem:[%s2162_s3 + $0x4f8] sm:$0xff] }
  0x4d   :  { %789 = vmatpush.msrb.mxu2 %v504_v7  ;;  %809 = vmatpush.msrb.mxu3 %v520_v8  ;;  %v576_v8 = vld [vmem:[%s2162_s3 + $0x578] sm:$0xff] }
  0x4e   :  { %750 = vmatpush.msrb.mxu0 %v471_v9  ;;  %770 = vmatpush.msrb.mxu1 %v487_v10  ;;  %v592_v9 = vld [vmem:[%s2162_s3 + $0x5f8] sm:$0xff]  ;;  %v543_v10 = vld [vmem:[%s2162_s3 + $0x470] sm:$0xff] }
  0x4f   :  { %790 = vmatpush.msrb.mxu2 %v503_v11  ;;  %810 = vmatpush.msrb.mxu3 %v519_v12  ;;  %v559_v11 = vld [vmem:[%s2162_s3 + $0x4f0] sm:$0xff] }
  0x50   :  { %751 = vmatpush.msrb.mxu0 %v470_v13  ;;  %771 = vmatpush.msrb.mxu1 %v486_v14  ;;  %v575_v12 = vld [vmem:[%s2162_s3 + $0x570] sm:$0xff]  ;;  %v542_v14 = vld [vmem:[%s2162_s3 + $0x468] sm:$0xff] }
  0x51   :  { %791 = vmatpush.msrb.mxu2 %v502_v15  ;;  %811 = vmatpush.msrb.mxu3 %v518_v16  ;;  %v591_v13 = vld [vmem:[%s2162_s3 + $0x5f0] sm:$0xff]  ;;  %v558_v15 = vld [vmem:[%s2162_s3 + $0x4e8] sm:$0xff] }
  0x52   :  { %752 = vmatpush.msrb.mxu0 %v469_v17  ;;  %772 = vmatpush.msrb.mxu1 %v485_v18  ;;  %v574_v16 = vld [vmem:[%s2162_s3 + $0x568] sm:$0xff]  ;;  %v541_v18 = vld [vmem:[%s2162_s3 + $0x460] sm:$0xff] }
  0x53   :  { %792 = vmatpush.msrb.mxu2 %v501_v19  ;;  %812 = vmatpush.msrb.mxu3 %v517_v20  ;;  %v590_v17 = vld [vmem:[%s2162_s3 + $0x5e8] sm:$0xff]  ;;  %v557_v19 = vld [vmem:[%s2162_s3 + $0x4e0] sm:$0xff] }
  0x54   :  { %753 = vmatpush.msrb.mxu0 %v468_v21  ;;  %773 = vmatpush.msrb.mxu1 %v484_v22 }
  0x55   :  { %793 = vmatpush.msrb.mxu2 %v500_v23  ;;  %813 = vmatpush.msrb.mxu3 %v516_v24  ;;  %v573_v24 = vld [vmem:[%s2162_s3 + $0x560] sm:$0xff] }
  0x56   :  { %754 = vmatpush.msrb.mxu0 %v467_v25  ;;  %774 = vmatpush.msrb.mxu1 %v483_v26  ;;  %v589_v25 = vld [vmem:[%s2162_s3 + $0x5e0] sm:$0xff] }
  0x57   :  { %794 = vmatpush.msrb.mxu2 %v499_v27  ;;  %814 = vmatpush.msrb.mxu3 %v515_v28 }
  0x58   :  { %755 = vmatpush.msrb.mxu0 %v466_v29  ;;  %775 = vmatpush.msrb.mxu1 %v482_v30 }
  0x59   :  { %795 = vmatpush.msrb.mxu2 %v498_v31  ;;  %815 = vmatpush.msrb.mxu3 %v514_v32  ;;  %v540_v32 = vld [vmem:[%s2162_s3 + $0x458] sm:$0xff] }
  0x5a   :  { %756 = vmatpush.msrb.mxu0 %v465_v33  ;;  %776 = vmatpush.msrb.mxu1 %v481_v34  ;;  %v556_v33 = vld [vmem:[%s2162_s3 + $0x4d8] sm:$0xff] }
  0x5b   :  { %796 = vmatpush.msrb.mxu2 %v497_v35  ;;  %816 = vmatpush.msrb.mxu3 %v513_v36  ;;  %v572_v36 = vld [vmem:[%s2162_s3 + $0x558] sm:$0xff] }
  0x85   :  { %v294_v55 = vpop.permute.xlu0 %293 }
  0x89   :  { %v110_v37 = vpop.f32.mrf.mxu0  ;;  %v133_v38 = vpop.f32.mrf.mxu1 }
  0x8c   :  { %v156_v39 = vpop.f32.mrf.mxu2  ;;  %v179_v40 = vpop.f32.mrf.mxu3 }
  0x8d   :  { %v277_v49 = vmax.f32 %v110_v37, %v156_v39  ;;  %v278_v50 = vmax.f32 %v133_v38, %v179_v40  ;;  %v588_v37 = vld [vmem:[%s2162_s3 + $0x5d8] sm:$0xff]  ;;  %v539_v40 = vld [vmem:[%s2162_s3 + $0x450] sm:$0xff] }
  0x91   :  { %v1693_v41 = vpop.f32.mrf.mxu0 }
  0x92   :  { %v1695_v42 = vpop.f32.mrf.mxu1 }
  0x94   :  { %v1697_v43 = vpop.f32.mrf.mxu2  ;;  %v1699_v44 = vpop.f32.mrf.mxu3 }
  0x9a   :  { %v202_v45 = vpop.f32.mrf.mxu0  ;;  %v225_v46 = vpop.f32.mrf.mxu1 }
  0x9c   :  { %v248_v47 = vpop.f32.mrf.mxu2  ;;  %v271_v48 = vpop.f32.mrf.mxu3 }
  0x9d   :  { %v281_v51 = vmax.f32 %v202_v45, %v248_v47  ;;  %v282_v52 = vmax.f32 %v225_v46, %v271_v48  ;;  %v555_v45 = vld [vmem:[%s2162_s3 + $0x4d0] sm:$0xff] }
  0x9e   :  { %v571_v48 = vld [vmem:[%s2162_s3 + $0x550] sm:$0xff] }
  0x9f   :  { %v285_v53 = vmax.f32 %v277_v49, %v281_v51  ;;  %v286_v54 = vmax.f32 %v278_v50, %v282_v52  ;;  %v587_v49 = vld [vmem:[%s2162_s3 + $0x5d0] sm:$0xff]  ;;  %v538_v50 = vld [vmem:[%s2162_s3 + $0x448] sm:$0xff] }
  0xa0   :  { %v554_v51 = vld [vmem:[%s2162_s3 + $0x4c8] sm:$0xff] }
  0xa1   :  { %v301_v56 = vadd.f32 %v294_v55, %v285_v53  ;;  %v302_v57 = vadd.f32 %v294_v55, %v286_v54  ;;  %v570_v52 = vld [vmem:[%s2162_s3 + $0x548] sm:$0xff] }
  0xa2   :  { %v205_v38 = vpop.f32.mrf.mxu0  ;;  %v228_v39 = vpop.f32.mrf.mxu1  ;;  %v586_v53 = vld [vmem:[%s2162_s3 + $0x5c8] sm:$0xff] }
  0xa3   :  { %v1701_v58 = vmax.f32 %v301_v56, 0.0  ;;  %v1703_v59 = vmax.f32 %v302_v57, 0.0  ;;  %v537_v56 = vld [vmem:[%s2162_s3 + $0x440] sm:$0xff] }
  0xa4   :  { %v251_v46 = vpop.f32.mrf.mxu2  ;;  %v274_v47 = vpop.f32.mrf.mxu3  ;;  %v553_v57 = vld [vmem:[%s2162_s3 + $0x4c0] sm:$0xff] }
  0xa5   :  { %v346_v60 = vrot.slane %v1703_v59, 7  ;;  %v310_v61 = vrot.slane %v1701_v58, 1  ;;  %v312_v62 = vrot.slane %v1701_v58, 2  ;;  %v1066_v63 = vrot.slane %v1703_v59, 9 }
  0xa6   :  { %v314_v0 = vrot.slane %v1701_v58, 3  ;;  %v1067_v1 = vrot.slane %v1703_v59, 10  ;;  %v316_v20 = vrot.slane %v1701_v58, 4  ;;  %v1068_v21 = vrot.slane %v1703_v59, 11 }
  0xa7   :  { %v385_v2 = vsel %vm68_vm0, %v1701_v58, %v346_v60  ;;  %v386_v3 = vsel %vm68_vm0, %v310_v61, %v1703_v59  ;;  %v387_v6 = vsel %vm68_vm0, %v312_v62, %v1066_v63  ;;  %v318_v22 = vrot.slane %v1701_v58, 5  ;;  %v536_v62 = vld [vmem:[%s2162_s3 + $0x438] sm:$0xff] }
  0xa8   :  { %677 = vmatmul.f32.vlgmr.msra.gmra.mxu0 %v385_v2  ;;  %697 = vmatmul.f32.vlgmr.msra.gmra.mxu1 %v386_v3  ;;  %v388_v7 = vsel %vm68_vm0, %v314_v0, %v1067_v1  ;;  %v1069_v23 = vrot.slane %v1703_v59, 12  ;;  %v320_v26 = vrot.slane %v1701_v58, 6  ;;  %v1070_v27 = vrot.slane %v1703_v59, 13  ;;  %v585_v59 = vld [vmem:[%s2162_s3 + $0x5c0] sm:$0xff]  ;;  %v552_v63 = vld [vmem:[%s2162_s3 + $0x4b8] sm:$0xff]  ;;  %v551_v1 = vld [vmem:[%s2162_s3 + $0x4b0] sm:$0xff] }
  0xa9   :  { %717 = vmatmul.f32.vlgmr.msra.gmra.mxu2 %v387_v6  ;;  %737 = vmatmul.f32.vlgmr.msra.gmra.mxu3 %v388_v7  ;;  %v361_v28 = vrot.slane %v346_v60, 7  ;;  %v322_v29 = vrot.slane %v1701_v58, 7  ;;  %v389_v30 = vsel %vm68_vm0, %v316_v20, %v1068_v21  ;;  %v283_v54 = vmax.f32 %v205_v38, %v251_v46  ;;  %v569_v58 = vld [vmem:[%s2162_s3 + $0x540] sm:$0xff]  ;;  %v568_v0 = vld [vmem:[%s2162_s3 + $0x538] sm:$0xff]  ;;  %v567_v2 = vld [vmem:[%s2162_s3 + $0x530] sm:$0xff]  ;;  %v299_v6 = vpop.permute.xlu0 %298 }
  0xaa   :  { %821 = vmatpush.msra.mxu0 %v544_v4  ;;  %841 = vmatpush.msra.mxu1 %v560_v5  ;;  %v390_v31 = vsel %vm68_vm0, %v318_v22, %v1069_v23  ;;  %v391_v34 = vsel %vm68_vm0, %v320_v26, %v1070_v27  ;;  %v284_v55 = vmax.f32 %v228_v39, %v274_v47  ;;  %v583_v3 = vld [vmem:[%s2162_s3 + $0x5b0] sm:$0xff]  ;;  %v534_v4 = vld [vmem:[%s2162_s3 + $0x428] sm:$0xff]  ;;  %v624_v46 = vld [vmem:[%s2162_s3 + $0x6f8] sm:$0xff] }
  0xab   :  { %861 = vmatpush.msra.mxu2 %v576_v8  ;;  %881 = vmatpush.msra.mxu3 %v592_v9  ;;  %v392_v35 = vsel %vm68_vm0, %v322_v29, %v361_v28  ;;  %v279_v60 = vmax.f32 %v1693_v41, %v1697_v43  ;;  %v280_v61 = vmax.f32 %v1695_v42, %v1699_v44  ;;  %v584_v41 = vld [vmem:[%s2162_s3 + $0x5b8] sm:$0xff]  ;;  %v535_v44 = vld [vmem:[%s2162_s3 + $0x430] sm:$0xff]  ;;  %v550_v5 = vld [vmem:[%s2162_s3 + $0x4a8] sm:$0xff] }
  0xac   :  { %822 = vmatpush.msra.mxu0 %v543_v10  ;;  %842 = vmatpush.msra.mxu1 %v559_v11  ;;  %v566_v7 = vld [vmem:[%s2162_s3 + $0x528] sm:$0xff]  ;;  %v533_v11 = vld [vmem:[%s2162_s3 + $0x420] sm:$0xff]  ;;  %v531_v21 = vld [vmem:[%s2162_s3 + $0x410] sm:$0xff] }
  0xad   :  { %862 = vmatpush.msra.mxu2 %v575_v12  ;;  %882 = vmatpush.msra.mxu3 %v591_v13  ;;  %v287_v42 = vmax.f32 %v279_v60, %v283_v54  ;;  %v288_v43 = vmax.f32 %v280_v61, %v284_v55  ;;  %v582_v8 = vld [vmem:[%s2162_s3 + $0x5a8] sm:$0xff]  ;;  %v549_v12 = vld [vmem:[%s2162_s3 + $0x4a0] sm:$0xff]  ;;  %v547_v22 = vld [vmem:[%s2162_s3 + $0x490] sm:$0xff] }
  0xae   :  { %823 = vmatpush.msra.mxu0 %v542_v14  ;;  %843 = vmatpush.msra.mxu1 %v558_v15  ;;  %v565_v13 = vld [vmem:[%s2162_s3 + $0x520] sm:$0xff]  ;;  %v532_v15 = vld [vmem:[%s2162_s3 + $0x418] sm:$0xff]  ;;  %v563_v23 = vld [vmem:[%s2162_s3 + $0x510] sm:$0xff] }
  0xaf   :  { %863 = vmatpush.msra.mxu2 %v574_v16  ;;  %883 = vmatpush.msra.mxu3 %v590_v17  ;;  %v303_v9 = vadd.f32 %v299_v6, %v287_v42  ;;  %v304_v10 = vadd.f32 %v299_v6, %v288_v43  ;;  %v581_v14 = vld [vmem:[%s2162_s3 + $0x5a0] sm:$0xff]  ;;  %v548_v16 = vld [vmem:[%s2162_s3 + $0x498] sm:$0xff]  ;;  %v546_v26 = vld [vmem:[%s2162_s3 + $0x488] sm:$0xff] }
  0xb0   :  { %824 = vmatpush.msra.mxu0 %v541_v18  ;;  %844 = vmatpush.msra.mxu1 %v557_v19  ;;  %v564_v17 = vld [vmem:[%s2162_s3 + $0x518] sm:$0xff]  ;;  %v562_v27 = vld [vmem:[%s2162_s3 + $0x508] sm:$0xff]  ;;  %v529_v29 = vld [vmem:[%s2162_s3 + $0x400] sm:$0xff] }
  0xb1   :  { %864 = vmatpush.msra.mxu2 %v573_v24  ;;  %884 = vmatpush.msra.mxu3 %v589_v25  ;;  %v580_v18 = vld [vmem:[%s2162_s3 + $0x598] sm:$0xff]  ;;  %v1888_v19 = vmax.f32 %v303_v9, 0.0  ;;  %v1890_v20 = vmax.f32 %v304_v10, 0.0  ;;  %v579_v24 = vld [vmem:[%s2162_s3 + $0x590] sm:$0xff]  ;;  %v530_v25 = vld [vmem:[%s2162_s3 + $0x408] sm:$0xff] }
  0xb2   :  { %757 = vmatmul.f32.vlgmr.msrb.gmra.mxu0 %v389_v30  ;;  %777 = vmatmul.f32.vlgmr.msrb.gmra.mxu1 %v390_v31  ;;  %v578_v28 = vld [vmem:[%s2162_s3 + $0x588] sm:$0xff]  ;;  %v545_v30 = vld [vmem:[%s2162_s3 + $0x480] sm:$0xff]  ;;  %v655_v54 = vld [vmem:[%s2162_s3 + $0x7f0] sm:$0xff] }
  0xb3   :  { %797 = vmatmul.f32.vlgmr.msrb.gmra.mxu2 %v391_v34  ;;  %817 = vmatmul.f32.vlgmr.msrb.gmra.mxu3 %v392_v35  ;;  %v354_v31 = vrot.slane %v1890_v20, 7  ;;  %v577_v34 = vld [vmem:[%s2162_s3 + $0x580] sm:$0xff]  ;;  %v327_v35 = vrot.slane %v1888_v19, 2  ;;  %v1073_v38 = vrot.slane %v1890_v20, 10  ;;  %v606_v55 = vld [vmem:[%s2162_s3 + $0x668] sm:$0xff]  ;;  %v652_v42 = vld [vmem:[%s2162_s3 + $0x7d8] sm:$0xff] }
  0xb4   :  { %825 = vmatpush.msra.mxu0 %v540_v32  ;;  %845 = vmatpush.msra.mxu1 %v556_v33  ;;  %v325_v32 = vrot.slane %v1888_v19, 1  ;;  %v561_v33 = vld [vmem:[%s2162_s3 + $0x500] sm:$0xff]  ;;  %v603_v43 = vld [vmem:[%s2162_s3 + $0x650] sm:$0xff]  ;;  %v650_v6 = vld [vmem:[%s2162_s3 + $0x7c8] sm:$0xff] }
  0xb5   :  { %865 = vmatpush.msra.mxu2 %v572_v36  ;;  %885 = vmatpush.msra.mxu3 %v588_v37  ;;  %v1072_v36 = vrot.slane %v1890_v20, 9  ;;  %v329_v37 = vrot.slane %v1888_v19, 3  ;;  %v393_v39 = vsel %vm68_vm0, %v1888_v19, %v354_v31  ;;  %v621_v60 = vld [vmem:[%s2162_s3 + $0x6e0] sm:$0xff] }
  0xb6   :  { %826 = vmatpush.msra.mxu0 %v539_v40  ;;  %846 = vmatpush.msra.mxu1 %v555_v45  ;;  %v394_v40 = vsel %vm68_vm0, %v325_v32, %v1890_v20  ;;  %v608_v45 = vld [vmem:[%s2162_s3 + $0x678] sm:$0xff]  ;;  %v637_v61 = vld [vmem:[%s2162_s3 + $0x760] sm:$0xff] }
  0xb7   :  { %866 = vmatpush.msra.mxu2 %v571_v48  ;;  %886 = vmatpush.msra.mxu3 %v587_v49  ;;  %v395_v47 = vsel %vm68_vm0, %v327_v35, %v1072_v36  ;;  %v396_v48 = vsel %vm68_vm0, %v329_v37, %v1073_v38  ;;  %v640_v49 = vld [vmem:[%s2162_s3 + $0x778] sm:$0xff]  ;;  %v633_v9 = vld [vmem:[%s2162_s3 + $0x740] sm:$0xff]  ;;  %v611_v35 = vld [vmem:[%s2162_s3 + $0x690] sm:$0xff] }
  0xb8   :  { %827 = vmatpush.msra.mxu0 %v538_v50  ;;  %847 = vmatpush.msra.mxu1 %v554_v51  ;;  %v656_v50 = vld [vmem:[%s2162_s3 + $0x7f8] sm:$0xff]  ;;  %v607_v51 = vld [vmem:[%s2162_s3 + $0x670] sm:$0xff]  ;;  %v649_v10 = vld [vmem:[%s2162_s3 + $0x7c0] sm:$0xff] }
  0xb9   :  { %867 = vmatpush.msra.mxu2 %v570_v52  ;;  %887 = vmatpush.msra.mxu3 %v586_v53  ;;  %v623_v52 = vld [vmem:[%s2162_s3 + $0x6f0] sm:$0xff]  ;;  %v628_v32 = vld [vmem:[%s2162_s3 + $0x718] sm:$0xff]  ;;  %v594_v38 = vld [vmem:[%s2162_s3 + $0x608] sm:$0xff] }
  0xba   :  { %828 = vmatpush.msra.mxu0 %v537_v56  ;;  %848 = vmatpush.msra.mxu1 %v553_v57  ;;  %v639_v53 = vld [vmem:[%s2162_s3 + $0x770] sm:$0xff]  ;;  %v622_v56 = vld [vmem:[%s2162_s3 + $0x6e8] sm:$0xff] }
  0xbb   :  { %868 = vmatpush.msra.mxu2 %v569_v58  ;;  %888 = vmatpush.msra.mxu3 %v585_v59  ;;  %v638_v57 = vld [vmem:[%s2162_s3 + $0x768] sm:$0xff]  ;;  %v605_v59 = vld [vmem:[%s2162_s3 + $0x660] sm:$0xff]  ;;  %v627_v36 = vld [vmem:[%s2162_s3 + $0x710] sm:$0xff] }
  0xbc   :  { %829 = vmatpush.msra.mxu0 %v536_v62  ;;  %849 = vmatpush.msra.mxu1 %v552_v63  ;;  %v654_v58 = vld [vmem:[%s2162_s3 + $0x7e8] sm:$0xff]  ;;  %v653_v62 = vld [vmem:[%s2162_s3 + $0x7e0] sm:$0xff]  ;;  %v604_v63 = vld [vmem:[%s2162_s3 + $0x658] sm:$0xff] }
  0xbd   :  { %869 = vmatpush.msra.mxu2 %v568_v0  ;;  %889 = vmatpush.msra.mxu3 %v584_v41  ;;  %v620_v0 = vld [vmem:[%s2162_s3 + $0x6d8] sm:$0xff]  ;;  %v643_v37 = vld [vmem:[%s2162_s3 + $0x790] sm:$0xff] }
  0xbe   :  { %830 = vmatpush.msra.mxu0 %v535_v44  ;;  %850 = vmatpush.msra.mxu1 %v551_v1  ;;  %v636_v41 = vld [vmem:[%s2162_s3 + $0x758] sm:$0xff]  ;;  %v619_v44 = vld [vmem:[%s2162_s3 + $0x6d0] sm:$0xff] }
  0xbf   :  { %870 = vmatpush.msra.mxu2 %v567_v2  ;;  %890 = vmatpush.msra.mxu3 %v583_v3  ;;  %v635_v1 = vld [vmem:[%s2162_s3 + $0x750] sm:$0xff]  ;;  %v602_v3 = vld [vmem:[%s2162_s3 + $0x648] sm:$0xff] }
  0xc0   :  { %831 = vmatpush.msra.mxu0 %v534_v4  ;;  %851 = vmatpush.msra.mxu1 %v550_v5  ;;  %v651_v2 = vld [vmem:[%s2162_s3 + $0x7d0] sm:$0xff]  ;;  %v618_v4 = vld [vmem:[%s2162_s3 + $0x6c8] sm:$0xff] }
  0xc1   :  { %871 = vmatpush.msra.mxu2 %v566_v7  ;;  %891 = vmatpush.msra.mxu3 %v582_v8  ;;  %v634_v5 = vld [vmem:[%s2162_s3 + $0x748] sm:$0xff]  ;;  %v601_v7 = vld [vmem:[%s2162_s3 + $0x640] sm:$0xff] }
  0xc2   :  { %832 = vmatpush.msra.mxu0 %v533_v11  ;;  %852 = vmatpush.msra.mxu1 %v549_v12  ;;  %v617_v8 = vld [vmem:[%s2162_s3 + $0x6c0] sm:$0xff]  ;;  %v600_v11 = vld [vmem:[%s2162_s3 + $0x638] sm:$0xff] }
  0xc3   :  { %872 = vmatpush.msra.mxu2 %v565_v13  ;;  %892 = vmatpush.msra.mxu3 %v581_v14  ;;  %v616_v12 = vld [vmem:[%s2162_s3 + $0x6b8] sm:$0xff] }
  0xc4   :  { %833 = vmatpush.msra.mxu0 %v532_v15  ;;  %853 = vmatpush.msra.mxu1 %v548_v16  ;;  %v632_v13 = vld [vmem:[%s2162_s3 + $0x738] sm:$0xff]  ;;  %v599_v15 = vld [vmem:[%s2162_s3 + $0x630] sm:$0xff] }
  0xc5   :  { %873 = vmatpush.msra.mxu2 %v564_v17  ;;  %893 = vmatpush.msra.mxu3 %v580_v18  ;;  %v648_v14 = vld [vmem:[%s2162_s3 + $0x7b8] sm:$0xff]  ;;  %v615_v16 = vld [vmem:[%s2162_s3 + $0x6b0] sm:$0xff] }
  0xc6   :  { %834 = vmatpush.msra.mxu0 %v531_v21  ;;  %854 = vmatpush.msra.mxu1 %v547_v22  ;;  %v631_v17 = vld [vmem:[%s2162_s3 + $0x730] sm:$0xff]  ;;  %v598_v21 = vld [vmem:[%s2162_s3 + $0x628] sm:$0xff] }
  0xc7   :  { %874 = vmatpush.msra.mxu2 %v563_v23  ;;  %894 = vmatpush.msra.mxu3 %v579_v24  ;;  %v647_v18 = vld [vmem:[%s2162_s3 + $0x7b0] sm:$0xff]  ;;  %v614_v22 = vld [vmem:[%s2162_s3 + $0x6a8] sm:$0xff] }
  0xc8   :  { %835 = vmatpush.msra.mxu0 %v530_v25  ;;  %855 = vmatpush.msra.mxu1 %v546_v26  ;;  %v630_v23 = vld [vmem:[%s2162_s3 + $0x728] sm:$0xff]  ;;  %v597_v25 = vld [vmem:[%s2162_s3 + $0x620] sm:$0xff] }
  0xc9   :  { %875 = vmatpush.msra.mxu2 %v562_v27  ;;  %895 = vmatpush.msra.mxu3 %v578_v28  ;;  %v646_v24 = vld [vmem:[%s2162_s3 + $0x7a8] sm:$0xff]  ;;  %v613_v26 = vld [vmem:[%s2162_s3 + $0x6a0] sm:$0xff] }
  0xca   :  { %836 = vmatpush.msra.mxu0 %v529_v29  ;;  %856 = vmatpush.msra.mxu1 %v545_v30  ;;  %v629_v27 = vld [vmem:[%s2162_s3 + $0x720] sm:$0xff]  ;;  %v596_v29 = vld [vmem:[%s2162_s3 + $0x618] sm:$0xff] }
  0xcb   :  { %876 = vmatpush.msra.mxu2 %v561_v33  ;;  %896 = vmatpush.msra.mxu3 %v577_v34  ;;  %v645_v28 = vld [vmem:[%s2162_s3 + $0x7a0] sm:$0xff]  ;;  %v612_v30 = vld [vmem:[%s2162_s3 + $0x698] sm:$0xff]  ;;  %v595_v34 = vld [vmem:[%s2162_s3 + $0x610] sm:$0xff] }
  0xcc   :  { %837 = vmatmul.f32.vlgmr.msra.gmra.mxu0 %v393_v39  ;;  %857 = vmatmul.f32.vlgmr.msra.gmra.mxu1 %v394_v40  ;;  %v644_v33 = vld [vmem:[%s2162_s3 + $0x798] sm:$0xff]  ;;  %v610_v39 = vld [vmem:[%s2162_s3 + $0x688] sm:$0xff] }
  0xcd   :  { %877 = vmatmul.f32.vlgmr.msra.gmra.mxu2 %v395_v47  ;;  %897 = vmatmul.f32.vlgmr.msra.gmra.mxu3 %v396_v48  ;;  %v626_v40 = vld [vmem:[%s2162_s3 + $0x708] sm:$0xff]  ;;  %v609_v47 = vld [vmem:[%s2162_s3 + $0x680] sm:$0xff]  ;;  %v331_v48 = vrot.slane %v1888_v19, 4 }
  0xce   :  { %901 = vmatpush.msrb.mxu0 %v608_v45  ;;  %921 = vmatpush.msrb.mxu1 %v624_v46  ;;  %v642_v45 = vld [vmem:[%s2162_s3 + $0x788] sm:$0xff]  ;;  %v593_v46 = vld [vmem:[%s2162_s3 + $0x600] sm:$0xff] }
  0xcf   :  { %941 = vmatpush.msrb.mxu2 %v640_v49  ;;  %961 = vmatpush.msrb.mxu3 %v656_v50  ;;  %v1074_v49 = vrot.slane %v1890_v20, 11  ;;  %v333_v50 = vrot.slane %v1888_v19, 5 }
  0xd0   :  { %902 = vmatpush.msrb.mxu0 %v607_v51  ;;  %922 = vmatpush.msrb.mxu1 %v623_v52  ;;  %v1075_v51 = vrot.slane %v1890_v20, 12  ;;  %v625_v52 = vld [vmem:[%s2162_s3 + $0x700] sm:$0xff] }
  0xd1   :  { %942 = vmatpush.msrb.mxu2 %v639_v53  ;;  %962 = vmatpush.msrb.mxu3 %v655_v54  ;;  %v641_v53 = vld [vmem:[%s2162_s3 + $0x780] sm:$0xff]  ;;  %v335_v54 = vrot.slane %v1888_v19, 6 }
  0xd2   :  { %903 = vmatpush.msrb.mxu0 %v606_v55  ;;  %923 = vmatpush.msrb.mxu1 %v622_v56  ;;  %v1076_v55 = vrot.slane %v1890_v20, 13  ;;  %v368_v56 = vrot.slane %v354_v31, 7  ;;  %v1084_v20 = vld [vmem:[%s2163_s4] ss:$0 sm:$0xff]  ;;  %s1113_s4 = smov 104  }
  0xd3   :  { %943 = vmatpush.msrb.mxu2 %v638_v57  ;;  %963 = vmatpush.msrb.mxu3 %v654_v58  ;;  %v337_v57 = vrot.slane %v1888_v19, 7  ;;  %v397_v58 = vsel %vm68_vm0, %v331_v48, %v1074_v49 }
  0xd4   :  { %904 = vmatpush.msrb.mxu0 %v605_v59  ;;  %924 = vmatpush.msrb.mxu1 %v621_v60  ;;  %v398_v59 = vsel %vm68_vm0, %v333_v50, %v1075_v51  ;;  %v399_v60 = vsel %vm68_vm0, %v335_v54, %v1076_v55 }
  0xd5   :  { %944 = vmatpush.msrb.mxu2 %v637_v61  ;;  %964 = vmatpush.msrb.mxu3 %v653_v62  ;;  %v400_v61 = vsel %vm68_vm0, %v337_v57, %v368_v56 }
  0xd6   :  { %905 = vmatpush.msrb.mxu0 %v604_v63  ;;  %925 = vmatpush.msrb.mxu1 %v620_v0 }
  0xd7   :  { %945 = vmatpush.msrb.mxu2 %v636_v41  ;;  %965 = vmatpush.msrb.mxu3 %v652_v42 }
  0xd8   :  { %906 = vmatpush.msrb.mxu0 %v603_v43  ;;  %926 = vmatpush.msrb.mxu1 %v619_v44 }
  0xd9   :  { %946 = vmatpush.msrb.mxu2 %v635_v1  ;;  %966 = vmatpush.msrb.mxu3 %v651_v2 }
  0xda   :  { %907 = vmatpush.msrb.mxu0 %v602_v3  ;;  %927 = vmatpush.msrb.mxu1 %v618_v4 }
  0xdb   :  { %947 = vmatpush.msrb.mxu2 %v634_v5  ;;  %967 = vmatpush.msrb.mxu3 %v650_v6 }
  0xdc   :  { %908 = vmatpush.msrb.mxu0 %v601_v7  ;;  %928 = vmatpush.msrb.mxu1 %v617_v8 }
  0xdd   :  { %948 = vmatpush.msrb.mxu2 %v633_v9  ;;  %968 = vmatpush.msrb.mxu3 %v649_v10 }
  0xde   :  { %909 = vmatpush.msrb.mxu0 %v600_v11  ;;  %929 = vmatpush.msrb.mxu1 %v616_v12 }
  0xdf   :  { %949 = vmatpush.msrb.mxu2 %v632_v13  ;;  %969 = vmatpush.msrb.mxu3 %v648_v14 }
  0xe0   :  { %910 = vmatpush.msrb.mxu0 %v599_v15  ;;  %930 = vmatpush.msrb.mxu1 %v615_v16 }
  0xe1   :  { %950 = vmatpush.msrb.mxu2 %v631_v17  ;;  %970 = vmatpush.msrb.mxu3 %v647_v18 }
  0xe2   :  { %911 = vmatpush.msrb.mxu0 %v598_v21  ;;  %931 = vmatpush.msrb.mxu1 %v614_v22 }
  0xe3   :  { %951 = vmatpush.msrb.mxu2 %v630_v23  ;;  %971 = vmatpush.msrb.mxu3 %v646_v24 }
  0xe4   :  { %912 = vmatpush.msrb.mxu0 %v597_v25  ;;  %932 = vmatpush.msrb.mxu1 %v613_v26  ;;  %v994_v26 = vld [vmem:[%s2164_s5] sm:$0xff] }
  0xe5   :  { %952 = vmatpush.msrb.mxu2 %v629_v27  ;;  %972 = vmatpush.msrb.mxu3 %v645_v28 }
  0xe6   :  { %913 = vmatpush.msrb.mxu0 %v596_v29  ;;  %933 = vmatpush.msrb.mxu1 %v612_v30 }
  0xe7   :  { %953 = vmatpush.msrb.mxu2 %v628_v32  ;;  %973 = vmatpush.msrb.mxu3 %v644_v33 }
  0xe8   :  { %914 = vmatpush.msrb.mxu0 %v595_v34  ;;  %934 = vmatpush.msrb.mxu1 %v611_v35  ;;  %v1085_v34 = vld [vmem:[%s2165_s6] ss:$0 sm:$0xff] }
  0xe9   :  { %954 = vmatpush.msrb.mxu2 %v627_v36  ;;  %974 = vmatpush.msrb.mxu3 %v643_v37 }
  0xea   :  { %915 = vmatpush.msrb.mxu0 %v594_v38  ;;  %935 = vmatpush.msrb.mxu1 %v610_v39 }
  0xeb   :  { %955 = vmatpush.msrb.mxu2 %v626_v40  ;;  %975 = vmatpush.msrb.mxu3 %v642_v45 }
  0xec   :  { %916 = vmatpush.msrb.mxu0 %v593_v46  ;;  %936 = vmatpush.msrb.mxu1 %v609_v47 }
  0xed   :  { %956 = vmatpush.msrb.mxu2 %v625_v52  ;;  %976 = vmatpush.msrb.mxu3 %v641_v53 }
  0xee   :  { %917 = vmatmul.f32.vlgmr.msrb.gmra.mxu0 %v397_v58  ;;  %937 = vmatmul.f32.vlgmr.msrb.gmra.mxu1 %v398_v59 }
  0xef   :  { %957 = vmatmul.f32.vlgmr.msrb.gmra.mxu2 %v399_v60  ;;  %977 = vmatmul.f32.vlgmr.msrb.gmra.mxu3 %v400_v61 }
  0xf0   :  { %1018 = vmatpush.msra.mxu0 %v994_v26 }
 0x125   :  { %v678_v31 = vpop.f32.mrf.mxu0  ;;  %v698_v62 = vpop.f32.mrf.mxu1 }
 0x126   :  { %v679_v19 = vadd.f32 %v1084_v20, %v678_v31 }
 0x128   :  { %v699_v0 = vadd.f32 %v698_v62, %v679_v19 }
 0x12c   :  { %v718_v63 = vpop.f32.mrf.mxu2  ;;  %v738_v42 = vpop.f32.mrf.mxu3 }
 0x12d   :  { %v719_v41 = vadd.f32 %v718_v63, %v699_v0 }
 0x12f   :  { %v739_v43 = vadd.f32 %v738_v42, %v719_v41  ;;  %v758_v44 = vpop.f32.mrf.mxu0  ;;  %v778_v2 = vpop.f32.mrf.mxu1 }
 0x131   :  { %v759_v1 = vadd.f32 %v758_v44, %v739_v43 }
 0x133   :  { %v779_v3 = vadd.f32 %v778_v2, %v759_v1 }
 0x136   :  { %v798_v4 = vpop.f32.mrf.mxu2  ;;  %v818_v6 = vpop.f32.mrf.mxu3 }
 0x137   :  { %v799_v5 = vadd.f32 %v798_v4, %v779_v3 }
 0x139   :  { %v819_v8 = vadd.f32 %v818_v6, %v799_v5 }
 0x149   :  { %v838_v7 = vpop.f32.mrf.mxu0  ;;  %v858_v10 = vpop.f32.mrf.mxu1 }
 0x14a   :  { %v839_v9 = vadd.f32 %v838_v7, %v819_v8 }
 0x14c   :  { %v859_v12 = vadd.f32 %v858_v10, %v839_v9 }
 0x150   :  { %v878_v11 = vpop.f32.mrf.mxu2  ;;  %v898_v14 = vpop.f32.mrf.mxu3 }
 0x151   :  { %v879_v13 = vadd.f32 %v878_v11, %v859_v12 }
 0x153   :  { %v899_v15 = vadd.f32 %v898_v14, %v879_v13 }
 0x16b   :  { %v918_v16 = vpop.f32.mrf.mxu0  ;;  %v938_v18 = vpop.f32.mrf.mxu1 }
 0x16c   :  { %v919_v17 = vadd.f32 %v918_v16, %v899_v15 }
 0x16e   :  { %v939_v21 = vadd.f32 %v938_v18, %v919_v17 }
 0x172   :  { %v958_v22 = vpop.f32.mrf.mxu2  ;;  %v978_v24 = vpop.f32.mrf.mxu3 }
 0x173   :  { %v959_v23 = vadd.f32 %v958_v22, %v939_v21 }
 0x175   :  { %v979_v25 = vadd.f32 %v978_v24, %v959_v23 }
 0x177   :  { %990 = vrot.lane.b32.xlu2 %v979_v25, %s1113_s4  ;;  %982 = vrot.lane.b32.xlu1 %v979_v25, %s1114_s20 }
 0x17f   :  { %986 = vrot.lane.b32.xlu1 %v979_v25, %s1115_s21 }
 0x1d1   :  { %v991_v32 = vpop.permute.xlu2 %990 }
 0x1e9   :  { %v983_v27 = vpop.permute.xlu1 %982 }
 0x1ea   :  { %v985_v28 = vmax.f32 %v979_v25, %v983_v27 }
 0x1f1   :  { %v987_v29 = vpop.permute.xlu1 %986 }
 0x1f2   :  { %v989_v30 = vmax.f32 %v985_v28, %v987_v29 }
 0x1f4   :  { %v993_v33 = vmax.f32 %v989_v30, %v991_v32 }
 0x1f6   :  { %1077 = vmatmul.msk.f32.vlgmr.msra.gmra.mxu0 %vm999_vm2, %v993_v33 }
 0x273   :  { %v1020_v35 = vpop.f32.mrf.mxu0 }
 0x274   :  { %v1021_v36 = vadd.f32 %v1085_v34, %v1020_v35 }
 0x276   :  { %1024 = vst.msk [vmem:[#allocation2] sm:$0x3] %vm1023_vm3, %v1021_v36 }
 0x277   :  { %1035 = dma.vmem_to_hbm [thread:$0]  %s1031_s26, 32, %s1033_s29, [#allocation3]  }
 0x278   :  { %1110 = dma.done.wait [#allocation3], 32  }
 0x279   :  { %1111 = vsyncadd [#allocation3], 4294967264 }
 0x27a   :  { %1040 = vsyncpa [#allocation3], 1 }

</bundles_post_ra>
